<compile_context>
chip_gen: v7x
topology: tpu7x:2x2x1
jax: 0.10.0
libtpu: 0.0.40
codegen_flags: <defaults>
</compile_context>

<pallas_src>
import jax
import jax.numpy as jnp
from jax.experimental import pallas as pl
from jax.experimental.pallas import tpu as pltpu

IN_EPS = 1e-5  # nn.InstanceNorm2d default eps


# ----------------------------------------------------------------------------
# Kernels
# ----------------------------------------------------------------------------
def _make_fused_kernel(hw_true, hw_pad, apply_in_io_dtype):
    """Single-pass kernel: stats + gate MLP + apply, one block of samples."""
    need_mask = hw_pad != hw_true
    inv_hw = 1.0 / float(hw_true)

    def kernel(x_ref, inw_ref, inb_ref, w1t_ref, b1_ref, w2_ref, b2_ref, o_ref):
        xf = x_ref[...].astype(jnp.float32)                         # (K, C, HWp)

        # Instance-norm stats over the spatial (lane) axis.  Padded lanes are
        # zero, so the plain sum is exact; divide by the true HW.  Variance
        # keeps the numerically safe (x - mu)^2 form (the single-pass
        # E[x^2]-mu^2 fusion is hidden DMA slack on v5e/v6e and risks
        # cancellation for near-constant channels).
        mu = jnp.sum(xf, axis=-1, keepdims=True) * inv_hw           # (K, C, 1)
        d = xf - mu
        if need_mask:
            lane = jax.lax.broadcasted_iota(jnp.int32, xf.shape, 2)
            d = jnp.where(lane < hw_true, d, 0.0)
        var = jnp.sum(d * d, axis=-1, keepdims=True) * inv_hw       # (K, C, 1)
        scale = jax.lax.rsqrt(var + IN_EPS) * inw_ref[...]          # (K, C, 1)

        # Pooled style feature: mean_HW(x - x_IN) == mu - in_b exactly.
        g = mu - inb_ref[...]                                       # (K, C, 1)

        # Channel-gate mini-MLP (1x1 convs on pooled features), VPU/XLU only.
        h = jnp.sum(g * w1t_ref[...], axis=1, keepdims=True) + b1_ref[...]
        h = jnp.maximum(h, 0.0)                                     # (K, 1, Cr)
        z = jnp.sum(h * w2_ref[...], axis=-1, keepdims=True) + b2_ref[...]
        gates = jax.nn.sigmoid(z)                                   # (K, C, 1)

        # out = x_IN + (x - x_IN)*gates == x*A + B  (single apply pass, no
        # x_IN temporary -> much smaller internal VMEM scratch).
        one_m_g = 1.0 - gates
        a = gates + scale * one_m_g                                 # (K, C, 1)
        b = (inb_ref[...] - mu * scale) * one_m_g                   # (K, C, 1)
        if apply_in_io_dtype:
            # bf16 apply on chips with a bf16 VALU: halves vreg/VMEM pressure.
            o_ref[...] = x_ref[...] * a.astype(o_ref.dtype) + b.astype(o_ref.dtype)
        else:
            o_ref[...] = (xf * a + b).astype(o_ref.dtype)

    return kernel


def _stats_kernel(x_ref, sum_ref, sq_ref):
    """Pass A of the HW-tiled path: per-(n,c) sum / sum-of-squares."""
    @pl.when(pl.program_id(1) == 0)
    def _():
        sum_ref[...] = jnp.zeros_like(sum_ref)
        sq_ref[...] = jnp.zeros_like(sq_ref)

    xf = x_ref[...].astype(jnp.float32)                             # (1, C, THW)
    sum_ref[...] += jnp.sum(xf, axis=-1, keepdims=True)
    sq_ref[...] += jnp.sum(xf * xf, axis=-1, keepdims=True)


def _make_apply_kernel(apply_in_io_dtype):
    """Pass B of the HW-tiled path: out = x*A + B (lane-dense FMA)."""
    def kernel(x_ref, a_ref, b_ref, o_ref):
        if apply_in_io_dtype:
            o_ref[...] = (x_ref[...] * a_ref[...].astype(o_ref.dtype)
                          + b_ref[...].astype(o_ref.dtype))
        else:
            o_ref[...] = (x_ref[...].astype(jnp.float32) * a_ref[...]
                          + b_ref[...]).astype(o_ref.dtype)
    return kernel


# ----------------------------------------------------------------------------
# Chip-aware tiling helpers
# ----------------------------------------------------------------------------
def _vmem_capacity_bytes():
    try:
        cap = int(pltpu.get_tpu_info().vmem_capacity_bytes)
        if cap > 0:
            return cap
    except Exception:
        pass
    return 64 << 20  # conservative fallback (v7x per-TensorCore VMEM)


def _bf16_apply_ok():
    # bf16 VALU exists on v6e / v7x; not on v5e and earlier.
    try:
        kind = jax.devices()[0].device_kind.lower()
        return not any(t in kind for t in ("v2", "v3", "v4", "v5"))
    except Exception:
        return False


def _choose_k(n, per_sample_bytes, budget_bytes):
    """Samples per grid step: as large as the VMEM budget allows, keeping at
    least 2 grid steps when possible and preferring an even step count so
    v7x's two TensorCores get balanced work.  No exact-divisor requirement
    (trailing block may be partial; per-sample math is independent)."""
    cap = max(1, min(n, budget_bytes // max(1, per_sample_bytes)))
    if n >= 2:
        cap = min(cap, -(-n // 2))            # keep >= 2 grid steps
    k = cap
    for cand in range(cap, max(0, cap // 2), -1):
        if (-(-n // cand)) % 2 == 0:          # even number of grid steps
            k = cand
            break
    return k


def _choose_hw_tile(hw_pad, c, bytes_per_elem, budget_bytes):
    """Largest multiple-of-128 tile that divides the padded HW and fits the
    per-block budget (exact division keeps the stats accumulation clean)."""
    nb = hw_pad // 128
    for d in range(nb, 0, -1):
        if nb % d == 0 and c * 128 * d * bytes_per_elem <= budget_bytes:
            return 128 * d
    return 128


# ----------------------------------------------------------------------------
# Forward wrapper
# ----------------------------------------------------------------------------
def snr_forward(x_nchw, in_w, in_b, w1, b1, w2, b2, *, vmem_budget_override=None):
    """x_nchw: (N, C, H, W). Returns (N, C, H, W) with the same dtype."""
    N, C, H, W = x_nchw.shape
    HW = H * W
    Cr = int(w1.shape[0])
    in_dtype = x_nchw.dtype
    itemsize = jnp.dtype(in_dtype).itemsize

    # (N, C, H, W) -> (N, C, HW): free contiguous reshape.  Pad HW up to a
    # multiple of 128 so every load/store is lane-dense (no masked vst).
    HWp = -(-HW // 128) * 128
    x = x_nchw.reshape(N, C, HW)
    if HWp != HW:
        x = jnp.pad(x, ((0, 0), (0, 0), (0, HWp - HW)))

    # Per-chip VMEM budgeting.  Per-element footprint: double-buffered input
    # and output (io dtype) plus ~2 blocks of f32 internal scratch for the
    # statistics temporaries.
    vmem_cap = _vmem_capacity_bytes()
    vmem_target = max(24 << 20, min(vmem_cap - (16 << 20), 100 << 20))
    if vmem_budget_override is not None:
        vmem_target = int(vmem_budget_override)
    bytes_per_elem = 4 * itemsize + 8
    per_sample_bytes = C * HWp * bytes_per_elem

    apply_io = (in_dtype == jnp.bfloat16) and _bf16_apply_ok()

    # Parameter layouts for the (C-on-sublanes, HW-on-lanes) kernels.
    inw = in_w.reshape(1, C, 1).astype(jnp.float32)
    inb = in_b.reshape(1, C, 1).astype(jnp.float32)
    w1_2d = w1.reshape(Cr, C).astype(jnp.float32)
    w2_2d = w2.reshape(C, Cr).astype(jnp.float32)

    # Two-pass HW-tiled path when one sample does not fit the block budget,
    # or when N == 1 and HW is large (the fused path would be a single grid
    # step: no pipelining and an idle second TensorCore on v7x).
    use_two_pass = per_sample_bytes > vmem_target or (N == 1 and HWp // 128 >= 8)

    if not use_two_pass:
        k = _choose_k(N, per_sample_bytes, vmem_target)
        grid = (-(-N // k),)
        block_bytes = k * per_sample_bytes
        vmem_limit = int(min(vmem_cap - (8 << 20),
                             max(32 << 20, block_bytes + (4 << 20))))

        w1t = jnp.transpose(w1_2d, (1, 0)).reshape(1, C, Cr)    # w1t[0,c,r]=w1[r,c]
        b1r = b1.reshape(1, 1, Cr).astype(jnp.float32)
        w2r = w2_2d.reshape(1, C, Cr)
        b2r = b2.reshape(1, C, 1).astype(jnp.float32)

        # TODO(synk): sweep pipeline_mode=pl.Buffered(3) on the x input once
        # blocks sit near the budget (small win when VMEM headroom allows).
        out = pl.pallas_call(
            _make_fused_kernel(HW, HWp, apply_io),
            out_shape=jax.ShapeDtypeStruct((N, C, HWp), in_dtype),
            grid_spec=pltpu.PrefetchScalarGridSpec(
                num_scalar_prefetch=0,
                grid=grid,
                in_specs=[
                    pl.BlockSpec((k, C, HWp), lambda n: (n, 0, 0)),   # x
                    pl.BlockSpec((1, C, 1), lambda n: (0, 0, 0)),     # IN weight
                    pl.BlockSpec((1, C, 1), lambda n: (0, 0, 0)),     # IN bias
                    pl.BlockSpec((1, C, Cr), lambda n: (0, 0, 0)),    # W1^T
                    pl.BlockSpec((1, 1, Cr), lambda n: (0, 0, 0)),    # b1
                    pl.BlockSpec((1, C, Cr), lambda n: (0, 0, 0)),    # W2
                    pl.BlockSpec((1, C, 1), lambda n: (0, 0, 0)),     # b2
                ],
                out_specs=pl.BlockSpec((k, C, HWp), lambda n: (n, 0, 0)),
            ),
            compiler_params=pltpu.CompilerParams(
                dimension_semantics=("parallel",),
                vmem_limit_bytes=vmem_limit),
        )(x, inw, inb, w1t, b1r, w2r, b2r)
    else:
        t_hw = _choose_hw_tile(HWp, C, bytes_per_elem, vmem_target)
        n_hw = HWp // t_hw
        vmem_limit = int(min(vmem_cap - (8 << 20),
                             max(32 << 20, C * t_hw * bytes_per_elem + (4 << 20))))

        # Pass A: per-(n,c) sum / sum-of-squares accumulated over HW tiles.
        sums, sqs = pl.pallas_call(
            _stats_kernel,
            out_shape=(jax.ShapeDtypeStruct((N, C, 1), jnp.float32),
                       jax.ShapeDtypeStruct((N, C, 1), jnp.float32)),
            grid_spec=pltpu.PrefetchScalarGridSpec(
                num_scalar_prefetch=0,
                grid=(N, n_hw),
                in_specs=[pl.BlockSpec((1, C, t_hw), lambda n, s: (n, 0, s))],
                out_specs=(pl.BlockSpec((1, C, 1), lambda n, s: (n, 0, 0)),
                           pl.BlockSpec((1, C, 1), lambda n, s: (n, 0, 0))),
            ),
            compiler_params=pltpu.CompilerParams(
                dimension_semantics=("parallel", "arbitrary"),
                vmem_limit_bytes=vmem_limit),
        )(x)

        # Tiny per-(n,c) math + gate MLP in plain JAX (N*C elements; negligible).
        mu = sums / float(HW)                                       # (N, C, 1)
        var = jnp.maximum(sqs / float(HW) - mu * mu, 0.0)           # E[x^2]-mu^2 (f32)
        scale = jax.lax.rsqrt(var + IN_EPS) * inw                   # (N, C, 1)
        g = (mu - inb)[..., 0]                                      # (N, C)
        h = jnp.maximum(g @ w1_2d.T + b1.astype(jnp.float32), 0.0)  # (N, Cr)
        gates = jax.nn.sigmoid(h @ w2_2d.T + b2.astype(jnp.float32))[..., None]
        one_m_g = 1.0 - gates
        A = gates + scale * one_m_g                                 # (N, C, 1)
        B = (inb - mu * scale) * one_m_g                            # (N, C, 1)

        # Pass B: lane-dense apply out = x*A + B over HW tiles.
        out = pl.pallas_call(
            _make_apply_kernel(apply_io),
            out_shape=jax.ShapeDtypeStruct((N, C, HWp), in_dtype),
            grid_spec=pltpu.PrefetchScalarGridSpec(
                num_scalar_prefetch=0,
                grid=(N, n_hw),
                in_specs=[
                    pl.BlockSpec((1, C, t_hw), lambda n, s: (n, 0, s)),
                    pl.BlockSpec((1, C, 1), lambda n, s: (n, 0, 0)),
                    pl.BlockSpec((1, C, 1), lambda n, s: (n, 0, 0)),
                ],
                out_specs=pl.BlockSpec((1, C, t_hw), lambda n, s: (n, 0, s)),
            ),
            compiler_params=pltpu.CompilerParams(
                dimension_semantics=("parallel", "parallel"),
                vmem_limit_bytes=vmem_limit),
        )(x, A, B)

    if HWp != HW:
        out = out[:, :, :HW]
    return out.reshape(N, C, H, W)


# ----------------------------------------------------------------------------
# Pure-JAX reference (identical semantics, NCHW)
# ----------------------------------------------------------------------------
def snr_reference(x, in_w, in_b, w1, b1, w2, b2):
    N, C, H, W = x.shape
    Cr = w1.shape[0]
    xf = x.astype(jnp.float32)
    mu = jnp.mean(xf, axis=(2, 3), keepdims=True)
    var = jnp.mean(jnp.square(xf - mu), axis=(2, 3), keepdims=True)
    x_in = (xf - mu) / jnp.sqrt(var + IN_EPS)
    x_in = x_in * in_w.reshape(1, C, 1, 1) + in_b.reshape(1, C, 1, 1)
    x_style = xf - x_in
    g = jnp.mean(x_style, axis=(2, 3))                              # (N, C)
    h = jnp.maximum(g @ w1.reshape(Cr, C).T + b1, 0.0)              # (N, Cr)
    gates = jax.nn.sigmoid(h @ w2.reshape(C, Cr).T + b2)            # (N, C)
    return x_in + x_style * gates[:, :, None, None]


if __name__ == "__main__":
    key = jax.random.PRNGKey(0)
    reduction = 16
    C = 32
    Cr = C // reduction

    kx1, kx2, kx3, k1, k2 = jax.random.split(key, 5)

    # InstanceNorm2d(affine=True) params: init weight=1, bias=0.
    in_w = jnp.ones((C,), jnp.float32)
    in_b = jnp.zeros((C,), jnp.float32)
    # Conv2d 1x1 weights, kaiming_normal_(fan_out, relu): std = sqrt(2/out_ch).
    w1 = jax.random.normal(k1, (Cr, C, 1, 1), jnp.float32) * jnp.sqrt(2.0 / Cr)
    b1 = jnp.zeros((Cr,), jnp.float32)
    w2 = jax.random.normal(k2, (C, Cr, 1, 1), jnp.float32) * jnp.sqrt(2.0 / C)
    b2 = jnp.zeros((C,), jnp.float32)
    params = (in_w, in_b, w1, b1, w2, b2)

    # 1) Fused path, lane-dense HW (16*16 = 256).
    x1 = jax.random.normal(kx1, (2, C, 16, 16), jnp.float32)
    out1 = jax.block_until_ready(snr_forward(x1, *params))
    assert out1.shape == x1.shape
    assert jnp.allclose(out1, snr_reference(x1, *params), atol=1e-4, rtol=1e-4), \
        "fused path mismatch"

    # 2) Fused path with HW padding (7*7=49 -> 128) and a partial batch block (N=3).
    x2 = jax.random.normal(kx2, (3, C, 7, 7), jnp.float32)
    out2 = jax.block_until_ready(snr_forward(x2, *params))
    assert jnp.allclose(out2, snr_reference(x2, *params), atol=1e-4, rtol=1e-4), \
        "padded / partial-batch path mismatch"

    # 3) HW-tiled two-pass path (forced with a small VMEM budget -> 5 HW tiles).
    x3 = jax.random.normal(kx3, (2, C, 24, 24), jnp.float32)
    out3 = jax.block_until_ready(snr_forward(x3, *params, vmem_budget_override=200_000))
    assert jnp.allclose(out3, snr_reference(x3, *params), atol=1e-4, rtol=1e-4), \
        "two-pass path mismatch"

    # 4) bf16 IO (apply runs in bf16 on chips with a bf16 VALU).
    x4 = x1.astype(jnp.bfloat16)
    out4 = jax.block_until_ready(snr_forward(x4, *params))
    assert out4.dtype == jnp.bfloat16
    assert jnp.allclose(out4.astype(jnp.float32), snr_reference(x4, *params),
                        atol=5e-2, rtol=5e-2), "bf16 path mismatch"

    print("KERNEL_OK")
</pallas_src>

<mosaic_0001>
module attributes {stable_mosaic.version = 11 : i64} {
  func.func @kernel(%arg0: i32, %arg1: memref<1x32x256xf32, #tpu.memory_space<vmem>>, %arg2: memref<1x32x1xf32, #tpu.memory_space<vmem>>, %arg3: memref<1x32x1xf32, #tpu.memory_space<vmem>>, %arg4: memref<1x32x2xf32, #tpu.memory_space<vmem>>, %arg5: memref<1x1x2xf32, #tpu.memory_space<vmem>>, %arg6: memref<1x32x2xf32, #tpu.memory_space<vmem>>, %arg7: memref<1x32x1xf32, #tpu.memory_space<vmem>>, %arg8: memref<1x32x256xf32, #tpu.memory_space<vmem>>) attributes {dimension_semantics = [#tpu.dimension_semantics<parallel>], iteration_bounds = array<i64: 2>, scalar_prefetch = 0 : i64, scratch_operands = 0 : i64, tpu.core_type = #tpu.core_type<tc>, window_params = [{transform_indices = @transform_0, window_bounds = array<i64: 1, 32, 256>}, {pipeline_mode = #tpu.pipeline_mode<synchronous>, transform_indices = @transform_1, window_bounds = array<i64: 1, 32, 1>}, {pipeline_mode = #tpu.pipeline_mode<synchronous>, transform_indices = @transform_2, window_bounds = array<i64: 1, 32, 1>}, {pipeline_mode = #tpu.pipeline_mode<synchronous>, transform_indices = @transform_3, window_bounds = array<i64: 1, 32, 2>}, {pipeline_mode = #tpu.pipeline_mode<synchronous>, transform_indices = @transform_4, window_bounds = array<i64: 1, 1, 2>}, {pipeline_mode = #tpu.pipeline_mode<synchronous>, transform_indices = @transform_5, window_bounds = array<i64: 1, 32, 2>}, {pipeline_mode = #tpu.pipeline_mode<synchronous>, transform_indices = @transform_6, window_bounds = array<i64: 1, 32, 1>}, {transform_indices = @transform_7, window_bounds = array<i64: 1, 32, 256>}]} {
    %c0 = arith.constant 0 : index
    %c0_0 = arith.constant 0 : index
    %c0_1 = arith.constant 0 : index
    %0 = vector.load %arg1[%c0, %c0_0, %c0_1] : memref<1x32x256xf32, #tpu.memory_space<vmem>>, vector<1x32x256xf32>
    %cst = arith.constant dense<0.000000e+00> : vector<1x32xf32>
    %1 = vector.multi_reduction <add>, %0, %cst [2] : vector<1x32x256xf32> to vector<1x32xf32>
    %2 = vector.shape_cast %1 : vector<1x32xf32> to vector<1x32x1xf32>
    %cst_2 = arith.constant 3.906250e-03 : f32
    %3 = vector.broadcast %cst_2 : f32 to vector<1x32x1xf32>
    %4 = arith.mulf %2, %3 : vector<1x32x1xf32>
    %5 = vector.broadcast %4 : vector<1x32x1xf32> to vector<1x32x256xf32>
    %6 = arith.subf %0, %5 : vector<1x32x256xf32>
    %7 = arith.mulf %6, %6 : vector<1x32x256xf32>
    %cst_3 = arith.constant dense<0.000000e+00> : vector<1x32xf32>
    %8 = vector.multi_reduction <add>, %7, %cst_3 [2] : vector<1x32x256xf32> to vector<1x32xf32>
    %9 = vector.shape_cast %8 : vector<1x32xf32> to vector<1x32x1xf32>
    %cst_4 = arith.constant 3.906250e-03 : f32
    %10 = vector.broadcast %cst_4 : f32 to vector<1x32x1xf32>
    %11 = arith.mulf %9, %10 : vector<1x32x1xf32>
    %cst_5 = arith.constant 9.99999974E-6 : f32
    %12 = vector.broadcast %cst_5 : f32 to vector<1x32x1xf32>
    %13 = arith.addf %11, %12 : vector<1x32x1xf32>
    %14 = math.rsqrt %13 : vector<1x32x1xf32>
    %c0_6 = arith.constant 0 : index
    %c0_7 = arith.constant 0 : index
    %c0_8 = arith.constant 0 : index
    %15 = vector.load %arg2[%c0_6, %c0_7, %c0_8] : memref<1x32x1xf32, #tpu.memory_space<vmem>>, vector<1x32x1xf32>
    %16 = arith.mulf %14, %15 : vector<1x32x1xf32>
    %c0_9 = arith.constant 0 : index
    %c0_10 = arith.constant 0 : index
    %c0_11 = arith.constant 0 : index
    %17 = vector.load %arg3[%c0_9, %c0_10, %c0_11] : memref<1x32x1xf32, #tpu.memory_space<vmem>>, vector<1x32x1xf32>
    %18 = arith.subf %4, %17 : vector<1x32x1xf32>
    %c0_12 = arith.constant 0 : index
    %c0_13 = arith.constant 0 : index
    %c0_14 = arith.constant 0 : index
    %19 = vector.load %arg4[%c0_12, %c0_13, %c0_14] : memref<1x32x2xf32, #tpu.memory_space<vmem>>, vector<1x32x2xf32>
    %20 = vector.broadcast %18 : vector<1x32x1xf32> to vector<1x32x2xf32>
    %21 = arith.mulf %20, %19 : vector<1x32x2xf32>
    %cst_15 = arith.constant dense<0.000000e+00> : vector<1x2xf32>
    %22 = vector.multi_reduction <add>, %21, %cst_15 [1] : vector<1x32x2xf32> to vector<1x2xf32>
    %23 = vector.shape_cast %22 : vector<1x2xf32> to vector<1x1x2xf32>
    %c0_16 = arith.constant 0 : index
    %c0_17 = arith.constant 0 : index
    %c0_18 = arith.constant 0 : index
    %24 = vector.load %arg5[%c0_16, %c0_17, %c0_18] : memref<1x1x2xf32, #tpu.memory_space<vmem>>, vector<1x1x2xf32>
    %25 = arith.addf %23, %24 : vector<1x1x2xf32>
    %cst_19 = arith.constant 0.000000e+00 : f32
    %26 = vector.broadcast %cst_19 : f32 to vector<1x1x2xf32>
    %27 = arith.maximumf %25, %26 : vector<1x1x2xf32>
    %c0_20 = arith.constant 0 : index
    %c0_21 = arith.constant 0 : index
    %c0_22 = arith.constant 0 : index
    %28 = vector.load %arg6[%c0_20, %c0_21, %c0_22] : memref<1x32x2xf32, #tpu.memory_space<vmem>>, vector<1x32x2xf32>
    %29 = vector.broadcast %27 : vector<1x1x2xf32> to vector<1x32x2xf32>
    %30 = arith.mulf %29, %28 : vector<1x32x2xf32>
    %cst_23 = arith.constant dense<0.000000e+00> : vector<1x32xf32>
    %31 = vector.multi_reduction <add>, %30, %cst_23 [2] : vector<1x32x2xf32> to vector<1x32xf32>
    %32 = vector.shape_cast %31 : vector<1x32xf32> to vector<1x32x1xf32>
    %c0_24 = arith.constant 0 : index
    %c0_25 = arith.constant 0 : index
    %c0_26 = arith.constant 0 : index
    %33 = vector.load %arg7[%c0_24, %c0_25, %c0_26] : memref<1x32x1xf32, #tpu.memory_space<vmem>>, vector<1x32x1xf32>
    %34 = arith.addf %32, %33 : vector<1x32x1xf32>
    %35 = arith.negf %34 : vector<1x32x1xf32>
    %36 = math.exp %35 : vector<1x32x1xf32>
    %cst_27 = arith.constant 1.000000e+00 : f32
    %37 = vector.broadcast %cst_27 : f32 to vector<1x32x1xf32>
    %38 = arith.addf %37, %36 : vector<1x32x1xf32>
    %39 = arith.divf %37, %38 : vector<1x32x1xf32>
    %cst_28 = arith.constant 1.000000e+00 : f32
    %40 = vector.broadcast %cst_28 : f32 to vector<1x32x1xf32>
    %41 = arith.subf %40, %39 : vector<1x32x1xf32>
    %42 = arith.mulf %16, %41 : vector<1x32x1xf32>
    %43 = arith.addf %39, %42 : vector<1x32x1xf32>
    %c0_29 = arith.constant 0 : index
    %c0_30 = arith.constant 0 : index
    %c0_31 = arith.constant 0 : index
    %44 = vector.load %arg3[%c0_29, %c0_30, %c0_31] : memref<1x32x1xf32, #tpu.memory_space<vmem>>, vector<1x32x1xf32>
    %45 = arith.mulf %4, %16 : vector<1x32x1xf32>
    %46 = arith.subf %44, %45 : vector<1x32x1xf32>
    %47 = arith.mulf %46, %41 : vector<1x32x1xf32>
    %48 = vector.broadcast %43 : vector<1x32x1xf32> to vector<1x32x256xf32>
    %49 = arith.mulf %0, %48 : vector<1x32x256xf32>
    %50 = vector.broadcast %47 : vector<1x32x1xf32> to vector<1x32x256xf32>
    %51 = arith.addf %49, %50 : vector<1x32x256xf32>
    %c0_32 = arith.constant 0 : index
    %c0_33 = arith.constant 0 : index
    %c0_34 = arith.constant 0 : index
    %52 = vector.load %arg8[%c0_32, %c0_33, %c0_34] : memref<1x32x256xf32, #tpu.memory_space<vmem>>, vector<1x32x256xf32>
    tpu.vector_store %arg8[%c0_32, %c0_33, %c0_34], %51 {strides = array<i32>} : memref<1x32x256xf32, #tpu.memory_space<vmem>>, vector<1x32x256xf32>,
    return
  }
  func.func @transform_0(%arg0: i32) -> (i32, i32, i32) {
    %c0_i32 = arith.constant 0 : i32
    %c0_i32_0 = arith.constant 0 : i32
    %c0_i32_1 = arith.constant 0 : i32
    return %arg0, %c0_i32, %c0_i32_0 : i32, i32, i32
  }
  func.func @transform_1(%arg0: i32) -> (i32, i32, i32) {
    %c0_i32 = arith.constant 0 : i32
    %c0_i32_0 = arith.constant 0 : i32
    %c0_i32_1 = arith.constant 0 : i32
    %c0_i32_2 = arith.constant 0 : i32
    return %c0_i32, %c0_i32_0, %c0_i32_1 : i32, i32, i32
  }
  func.func @transform_2(%arg0: i32) -> (i32, i32, i32) {
    %c0_i32 = arith.constant 0 : i32
    %c0_i32_0 = arith.constant 0 : i32
    %c0_i32_1 = arith.constant 0 : i32
    %c0_i32_2 = arith.constant 0 : i32
    return %c0_i32, %c0_i32_0, %c0_i32_1 : i32, i32, i32
  }
  func.func @transform_3(%arg0: i32) -> (i32, i32, i32) {
    %c0_i32 = arith.constant 0 : i32
    %c0_i32_0 = arith.constant 0 : i32
    %c0_i32_1 = arith.constant 0 : i32
    %c0_i32_2 = arith.constant 0 : i32
    return %c0_i32, %c0_i32_0, %c0_i32_1 : i32, i32, i32
  }
  func.func @transform_4(%arg0: i32) -> (i32, i32, i32) {
    %c0_i32 = arith.constant 0 : i32
    %c0_i32_0 = arith.constant 0 : i32
    %c0_i32_1 = arith.constant 0 : i32
    %c0_i32_2 = arith.constant 0 : i32
    return %c0_i32, %c0_i32_0, %c0_i32_1 : i32, i32, i32
  }
  func.func @transform_5(%arg0: i32) -> (i32, i32, i32) {
    %c0_i32 = arith.constant 0 : i32
    %c0_i32_0 = arith.constant 0 : i32
    %c0_i32_1 = arith.constant 0 : i32
    %c0_i32_2 = arith.constant 0 : i32
    return %c0_i32, %c0_i32_0, %c0_i32_1 : i32, i32, i32
  }
  func.func @transform_6(%arg0: i32) -> (i32, i32, i32) {
    %c0_i32 = arith.constant 0 : i32
    %c0_i32_0 = arith.constant 0 : i32
    %c0_i32_1 = arith.constant 0 : i32
    %c0_i32_2 = arith.constant 0 : i32
    return %c0_i32, %c0_i32_0, %c0_i32_1 : i32, i32, i32
  }
  func.func @transform_7(%arg0: i32) -> (i32, i32, i32) {
    %c0_i32 = arith.constant 0 : i32
    %c0_i32_0 = arith.constant 0 : i32
    %c0_i32_1 = arith.constant 0 : i32
    return %arg0, %c0_i32, %c0_i32_0 : i32, i32, i32
  }
}

</mosaic_0001>

<bundles_post_ra>
// kernel: tpu_custom_call.1
= control target key start
LH: loop header
LB: loop body
LE: loop exit
PB: predicated region body
PF: predicated region fallthrough
CT: control target
= control target key end

     0   :  { %12 = vsyncpa [#allocation3], 0  ;;  %s1074_s0 = inlined_call_operand.vmem [shape: f32[2,32,256], index: 0, kind: input, shape index: {}]   ;;  %s1075_s1 = inlined_call_operand.vmem [shape: f32[1,32,1], index: 1, kind: input, shape index: {}]   ;;  %s1076_s2 = inlined_call_operand.vmem [shape: f32[1,32,1], index: 2, kind: input, shape index: {}]   ;;  %s1077_s3 = inlined_call_operand.vmem [shape: f32[1,32,2], index: 3, kind: input, shape index: {}]   ;;  %s1078_s4 = inlined_call_operand.vmem [shape: f32[1,1,2], index: 4, kind: input, shape index: {}]   ;;  %s1079_s5 = inlined_call_operand.vmem [shape: f32[1,32,2], index: 5, kind: input, shape index: {}]   ;;  %s1080_s6 = inlined_call_operand.vmem [shape: f32[1,32,1], index: 6, kind: input, shape index: {}]   ;;  %s1081_s7 = inlined_call_operand.hbm [shape: f32[2,32,256], index: 7, kind: output, shape index: {}]  }
   0x1   :  { %14 = vsyncpa [#allocation3 + $0x1], 0  ;;  %s816_s24 = smov 0   ;;  %s818_s25 = smov 0  }
   0x2   :  { %s820_s26 = smov 0   ;;  %s822_s27 = smov 0  }
   0x3 LB: > { %s837_s28 = sadd.s32 4294967295, %s770_s27   ;;  %s622_s29 = sadd.s32 4294967294, %s770_s27   ;;  %s770_s27 = sphi %s822_s27, %s1087_s27   ;;  %s766_s26 = sphi %s820_s26, %s1086_s26   ;;  %s762_s25 = sphi %s818_s25, %s1085_s25   ;;  %s758_s24 = sphi %s816_s24, %s1084_s24  }
   0x4   : > { %s841_s30 = sadd.s32 1, %s770_s27   ;;  %s179_s8 = sadd.s32 1, %s766_s26 }
   0x5   : > { %s176_s9 = ssub.s32 %s770_s27, %s841_s30  ;;  %p189_p0 = scmp.ne.s32.totalorder %s766_s26, %s762_s25 }
   0x6   : > { %p177_p1 = scmp.eq.s32.totalorder %s176_s9, 0  ;;  %p190_p2 = scmp.eq.s32.totalorder %s837_s28, 1 }
   0x7   : > { %p195_p3 = scmp.ne.s32.totalorder %s762_s25, %s758_s24  ;;  %p196_p4 = scmp.eq.s32.totalorder %s622_s29, 1 }
   0x8   : > { %s852_s10 = scalar_select %p177_p1, %s766_s26, %s179_s8  }
   0x9   : > { %p854_p5 = por %p190_p2, %p189_p0  ;;  %p858_p6 = por %p196_p4, %p195_p3 }
   0xa   : > { %p625_p7 = scmp.ge.s32.totalorder %s770_s27, 1  ;;  %p240_p8 = scmp.lt.s32.totalorder %s770_s27, 3 }
   0xc   : > { %p241_p9 = pnand %p625_p7, %p240_p8 }
   0xd   : > { %p272_p10 = scmp.lt.s32.totalorder (!%p241_p9), %s837_s28, 1  ;;  %v772_v12 = vmov (!%p241_p9), 0   ;;  %v896_v14 = vld [vmem:[%s1076_s2] sm:$0xff] (!%p241_p9)  ;;  %v905_v19 = vld [vmem:[%s1076_s2 + $0x8] sm:$0xff] (!%p241_p9)  ;;  %v914_v23 = vld [vmem:[%s1076_s2 + $0x10] sm:$0xff] (!%p241_p9)  ;;  %vm385_vm0 = vcmask (!%p241_p9), 15360   ;;  %v406_v51 = vlaneseq (!%p241_p9) }
   0xe   : > { %244 = sbr.rel (%p241_p9) target bundleno = 678 (0x2a6), region = 48  ;;  %682 = vset.pattern.permute.xlu0 (!%p241_p9), %v772_v12  ;;  %683 = vset.pattern.permute.xlu1 (!%p241_p9), %v772_v12  ;;  %v925_v27 = vld [vmem:[%s1076_s2 + $0x18] sm:$0xff] (!%p241_p9)  ;;  %v358_v29 = vld [vmem:[%s1077_s3 + $0x8] sm:$0xff] (!%p241_p9)  ;;  %v357_v30 = vld [vmem:[%s1077_s3] sm:$0xff] (!%p241_p9)  ;;  %s269_s18 = sand.u32 (!%p241_p9), 1, %s762_s25  }
   0xf   : > { %v359_v34 = vld [vmem:[%s1077_s3 + $0x10] sm:$0xff] (!%p241_p9)  ;;  %v360_v39 = vld [vmem:[%s1077_s3 + $0x18] sm:$0xff] (!%p241_p9)  ;;  %v407_v54 = vshrl.u32 (!%p241_p9), %v406_v51, 7  ;;  %v399_v55 = vld [vmem:[%s1078_s4] sm:$0x1] (!%p241_p9)  ;;  %s626_s19 = sshll.u32 (!%p241_p9), %s269_s18, 6 }
  0x10   : > { %v403_v60 = vld [vmem:[%s1079_s5 + $0x8] sm:$0xff] (!%p241_p9)  ;;  %v402_v61 = vld [vmem:[%s1079_s5] sm:$0xff] (!%p241_p9)  ;;  %v428_v51 = vld [vmem:[%s1080_s6 + $0x10] sm:$0xff] (!%p241_p9)  ;;  %s271_s20 = scalar_lea.vmem (!%p241_p9), [#allocation2], %s626_s19  ;;  %s639_s21 = sshll.u32 (!%p241_p9), %s837_s28, 10 }
  0x11   : > { %v408_v58 = vsub.s32 (!%p241_p9), 0, %v407_v54  ;;  %s560_s22 = sshll.u32 (!%p241_p9), %s271_s20, 4  ;;  %s1027_s8 = scalar_lea.hbm (!%p241_p9), %s1081_s7, %s639_s21  ;;  %s1029_s22 = int_to_ptr.vmem [resolvable:$true] %s560_s22 }
  0x12   : > { %s708_s9 = scalar_lea.vmem (!%p241_p9), %s1029_s22, 1024 }
  0x13   : > { %p709_p11 = scmp.ne.s32.totalorder (!%p241_p9), %s1029_s22, %s708_s9 }
  0x15   : > { %s273_s13 = scalar_select %p272_p10, %s837_s28, 1 }
  0x16   : > { %s1033_s28 = scalar_lea.sflag [#allocation3], %s269_s18  ;;  %p710_p12 = pnand %p709_p11, %p854_p5 }
  0x17   : > { %s638_s14 = sshll.u32 %s273_s13, 6  ;;  %s773_s13 = smov [#allocation2]  }
  0x18   : > { %s276_s17 = scalar_lea.vmem %s1074_s0, %s638_s14  ;;  %p711_p13 = pneg %p710_p12 }
  0x19   : > { %v869_v0 = vld [vmem:[%s276_s17] sm:$0xff]  ;;  %v871_v1 = vld [vmem:[%s276_s17 + $0x8] sm:$0xff]  ;;  %v873_v2 = vld [vmem:[%s276_s17 + $0x10] sm:$0xff]  ;;  %s712_s14 = sshll.u32 %s773_s13, 4  ;;  %s713_s14 = int_to_ptr.vmem [resolvable:$false] %s712_s14 }
  0x1a   : > { %v285_v3 = vadd.f32 %v871_v1, %v869_v0  ;;  %v877_v4 = vld [vmem:[%s276_s17 + $0x18] sm:$0xff]  ;;  %v879_v5 = vld [vmem:[%s276_s17 + $0x20] sm:$0xff]  ;;  %v881_v6 = vld [vmem:[%s276_s17 + $0x28] sm:$0xff]  ;;  %s714_s15 = scalar_lea.vmem %s713_s14, 2048  ;;  %p715_p0 = scmp.lt.s32.totalorder %s1029_s22, %s713_s14 }
  0x1b   : > { %v291_v7 = vadd.f32 %v881_v6, %v879_v5  ;;  %v885_v8 = vld [vmem:[%s276_s17 + $0x30] sm:$0xff]  ;;  %v887_v9 = vld [vmem:[%s276_s17 + $0x38] sm:$0xff]  ;;  %v288_v10 = vadd.f32 %v877_v4, %v873_v2  ;;  %p716_p1 = scmp.lt.s32.totalorder %s714_s15, %s708_s9 }
  0x1c   : > { %286 = vadd.xlane.f32.xlu0 %v285_v3  ;;  %v294_v11 = vadd.f32 %v887_v9, %v885_v8 }
  0x1d   : > { %292 = vadd.xlane.f32.xlu1 %v291_v7  ;;  %v404_v7 = vld [vmem:[%s1079_s5 + $0x10] sm:$0xff]  ;;  %p717_p2 = por %p716_p1, %p715_p0 }
  0x1f   : > { %p718_p3 = pnand %p717_p2, %p711_p13 }
  0x20   : > { %289 = vadd.xlane.f32.xlu0 %v288_v10 }
  0x21   : > { %295 = vadd.xlane.f32.xlu1 %v294_v11 }
  0xa9   : > { %v287_v13 = vpop.xlane.xlu0 %286 }
  0xaa   : > { %v898_v15 = vmul.f32 0.00390625, %v287_v13  ;;  %v293_v16 = vpop.xlane.xlu1 %292 }
  0xab   : > { %v909_v21 = vmul.f32 0.00390625, %v293_v16 }
  0xac   : > { %v353_v17 = vsub.f32 %v898_v15, %v896_v14 }
  0xad   : > { %v290_v18 = vpop.xlane.xlu0 %289  ;;  %v355_v26 = vsub.f32 %v909_v21, %v914_v23  ;;  %v305_v62 = vsub.f32 %v879_v5, %v909_v21  ;;  %v306_v63 = vsub.f32 %v881_v6, %v909_v21 }
  0xae   : > { %v907_v20 = vmul.f32 0.00390625, %v290_v18  ;;  %363 = vperm.xlu0 %682, %v353_v17   ;;  %v296_v22 = vpop.xlane.xlu1 %295 }
  0xaf   : > { %v918_v25 = vmul.f32 0.00390625, %v296_v22  ;;  %v313_v12 = vmul.f32 %v305_v62, %v305_v62  ;;  %v314_v13 = vmul.f32 %v306_v63, %v306_v63  ;;  %v405_v22 = vld [vmem:[%s1079_s5 + $0x18] sm:$0xff] }
  0xb0   : > { %v354_v24 = vsub.f32 %v907_v20, %v905_v19 }
  0xb1   : > { %v356_v28 = vsub.f32 %v918_v25, %v925_v27 }
  0xb2   : > { %368 = vperm.xlu1 %683, %v354_v24   ;;  %v301_v24 = vsub.f32 %v869_v0, %v898_v15 }
  0xb6   : > { %373 = vperm.xlu1 %683, %v355_v26   ;;  %v302_v26 = vsub.f32 %v871_v1, %v898_v15 }
  0xba   : > { %378 = vperm.xlu1 %683, %v356_v28   ;;  %v323_v28 = vadd.f32 %v314_v13, %v313_v12 }
 0x12d   : > { %v364_v31 = vpop.permute.xlu0 %363 }
 0x12e   : > { %v381_v35 = vmul.f32 %v364_v31, %v357_v30  ;;  %v309_v31 = vmul.f32 %v301_v24, %v301_v24 }
 0x130   : > { %v386_v40 = vsel %vm385_vm0, %v381_v35, 0.0 }
 0x131   : > { %v369_v32 = vpop.permute.xlu1 %368 }
 0x132   : > { %v382_v33 = vmul.f32 %v369_v32, %v358_v29  ;;  %v310_v32 = vmul.f32 %v302_v26, %v302_v26 }
 0x134   : > { %v387_v37 = vsel %vm385_vm0, %v382_v33, 0.0  ;;  %v303_v33 = vsub.f32 %v873_v2, %v907_v20 }
 0x135   : > { %v374_v36 = vpop.permute.xlu1 %373  ;;  %v388_v42 = vadd.f32 %v387_v37, %v386_v40  ;;  %v308_v40 = vsub.f32 %v887_v9, %v918_v25 }
 0x136   : > { %v383_v38 = vmul.f32 %v374_v36, %v359_v34  ;;  %v304_v34 = vsub.f32 %v877_v4, %v907_v20  ;;  %v317_v36 = vadd.f32 %v310_v32, %v309_v31  ;;  %v311_v37 = vmul.f32 %v303_v33, %v303_v33  ;;  %v341_v33 = vld [vmem:[%s1075_s1] sm:$0xff] }
 0x138   : > { %v389_v41 = vsel %vm385_vm0, %v383_v38, 0.0  ;;  %v312_v38 = vmul.f32 %v304_v34, %v304_v34 }
 0x139   : > { %v379_v43 = vpop.permute.xlu1 %378  ;;  %v390_v45 = vadd.f32 %v389_v41, %v388_v42 }
 0x13a   : > { %v384_v44 = vmul.f32 %v379_v43, %v360_v39  ;;  %v307_v39 = vsub.f32 %v885_v8, %v918_v25  ;;  %v320_v41 = vadd.f32 %v312_v38, %v311_v37  ;;  %v316_v43 = vmul.f32 %v308_v40, %v308_v40  ;;  %v342_v38 = vld [vmem:[%s1075_s1 + $0x8] sm:$0xff] }
 0x13c   : > { %v391_v46 = vsel %vm385_vm0, %v384_v44, 0.0  ;;  %v315_v42 = vmul.f32 %v307_v39, %v307_v39 }
 0x13d   : > { %v392_v47 = vadd.f32 %v391_v46, %v390_v45  ;;  %v427_v45 = vld [vmem:[%s1080_s6 + $0x8] sm:$0xff]  ;;  %v426_v46 = vld [vmem:[%s1080_s6] sm:$0xff] }
 0x13e   : > { %v326_v44 = vadd.f32 %v316_v43, %v315_v42 }
 0x13f   : > { %v393_v48 = vrot.slane %v392_v47, 4 }
 0x141   : > { %v394_v49 = vadd.f32 %v393_v48, %v392_v47 }
 0x143   : > { %v395_v50 = vrot.slane %v394_v49, 2 }
 0x145   : > { %v396_v52 = vadd.f32 %v395_v50, %v394_v49 }
 0x147   : > { %v397_v53 = vrot.slane %v396_v52, 1 }
 0x149   : > { %v398_v56 = vadd.f32 %v397_v53, %v396_v52 }
 0x14b   : > { %v400_v57 = vadd.f32 %v399_v55, %v398_v56  ;;  %v429_v56 = vld [vmem:[%s1080_s6 + $0x18] sm:$0xff] }
 0x14d   : > { %v401_v59 = vmax.f32 %v400_v57, 0.0 }
 0x14f   : > { %v409_v3 = vrot.slane %v401_v59, %v408_v58 }
 0x151   : > { %v411_v10 = vmul.f32 %v409_v3, %v403_v60  ;;  %v410_v11 = vmul.f32 %v409_v3, %v402_v61  ;;  %v412_v18 = vmul.f32 %v409_v3, %v404_v7  ;;  %v413_v30 = vmul.f32 %v409_v3, %v405_v22 }
 0x153   : > { %v417_v16 = vsel %vm385_vm0, %v411_v10, 0.0  ;;  %v414_v17 = vsel %vm385_vm0, %v410_v11, 0.0  ;;  %v420_v29 = vsel %vm385_vm0, %v412_v18, 0.0  ;;  %v423_v35 = vsel %vm385_vm0, %v413_v30, 0.0 }
 0x154   : > { %418 = vadd.xlane.f32.xlu0 %v417_v16  ;;  %415 = vadd.xlane.f32.xlu1 %v414_v17 }
 0x158   : > { %324 = vadd.xlane.f32.xlu0 %v323_v28  ;;  %421 = vadd.xlane.f32.xlu1 %v420_v29 }
 0x15c   : > { %424 = vadd.xlane.f32.xlu1 %v423_v35 }
 0x160   : > { %318 = vadd.xlane.f32.xlu1 %v317_v36 }
 0x164   : > { %321 = vadd.xlane.f32.xlu1 %v320_v41 }
 0x168   : > { %327 = vadd.xlane.f32.xlu1 %v326_v44 }
 0x1e1   : > { %v419_v47 = vpop.xlane.xlu0 %418  ;;  %v416_v48 = vpop.xlane.xlu1 %415 }
 0x1e2   : > { %v431_v49 = vadd.f32 %v427_v45, %v419_v47  ;;  %v430_v50 = vadd.f32 %v426_v46, %v416_v48  ;;  %v343_v47 = vld [vmem:[%s1075_s1 + $0x10] sm:$0xff] }
 0x1e4   : > { %v630_v52 = vmul.f32 -1.442695, %v431_v49  ;;  %v629_v53 = vmul.f32 -1.442695, %v430_v50 }
 0x1e5   : > { %v422_v54 = vpop.xlane.xlu1 %421  ;;  %v325_v60 = vpop.xlane.xlu0 %324 }
 0x1e6   : > { %684 = vpow2.f32 %v630_v52  ;;  %v432_v55 = vadd.f32 %v428_v51, %v422_v54  ;;  %v331_v3 = vmul.f32 0.00390625, %v325_v60 }
 0x1e7   : > { %686 = vpow2.f32 %v629_v53 }
 0x1e8   : > { %v631_v57 = vmul.f32 -1.442695, %v432_v55  ;;  %v335_v18 = vadd.f32 1e-05, %v331_v3 }
 0x1e9   : > { %v425_v58 = vpop.xlane.xlu1 %424 }
 0x1ea   : > { %v433_v59 = vadd.f32 %v429_v56, %v425_v58  ;;  %688 = vpow2.f32 %v631_v57 }
 0x1ec   : > { %v632_v61 = vmul.f32 -1.442695, %v433_v59 }
 0x1ed   : > { %v319_v62 = vpop.xlane.xlu1 %318 }
 0x1ee   : > { %690 = vpow2.f32 %v632_v61  ;;  %v329_v63 = vmul.f32 0.00390625, %v319_v62 }
 0x1f0   : > { %v685_v7 = vpop.eup %684  ;;  %v333_v10 = vadd.f32 1e-05, %v329_v63 }
 0x1f1   : > { %v687_v11 = vpop.eup %686  ;;  %v447_v12 = vadd.f32 1.0, %v685_v7  ;;  %v322_v13 = vpop.xlane.xlu1 %321 }
 0x1f2   : > { %v446_v16 = vadd.f32 1.0, %v687_v11  ;;  %692 = vrsqrt.f32 %v333_v10  ;;  %v330_v17 = vmul.f32 0.00390625, %v322_v13 }
 0x1f3   : > { %694 = vrcp.f32 %v447_v12 }
 0x1f4   : > { %696 = vrcp.f32 %v446_v16  ;;  %v334_v22 = vadd.f32 1e-05, %v330_v17  ;;  %v689_v24 = vpop.eup %688 }
 0x1f5   : > { %v328_v26 = vpop.xlane.xlu1 %327  ;;  %v448_v28 = vadd.f32 1.0, %v689_v24 }
 0x1f6   : > { %698 = vrsqrt.f32 %v334_v22  ;;  %v332_v29 = vmul.f32 0.00390625, %v328_v26 }
 0x1f7   : > { %700 = vrsqrt.f32 %v335_v18 }
 0x1f8   : > { %v691_v30 = vpop.eup %690  ;;  %702 = vrcp.f32 %v448_v28  ;;  %v336_v31 = vadd.f32 1e-05, %v332_v29 }
 0x1f9   : > { %v449_v32 = vadd.f32 1.0, %v691_v30 }
 0x1fa   : > { %704 = vrsqrt.f32 %v336_v31 }
 0x1fb   : > { %706 = vrcp.f32 %v449_v32 }
 0x1fc   : > { %v693_v34 = vpop.eup %692 }
 0x1fd   : > { %v695_v35 = vpop.eup %694  ;;  %v345_v36 = vmul.f32 %v693_v34, %v341_v33 }
 0x1fe   : > { %v697_v37 = vpop.eup %696  ;;  %v459_v45 = vsub.f32 1.0, %v695_v35 }
 0x1ff   : > { %v470_v39 = vmul.f32 %v345_v36, %v898_v15  ;;  %v458_v42 = vsub.f32 1.0, %v697_v37  ;;  %v344_v15 = vld [vmem:[%s1075_s1 + $0x18] sm:$0xff] }
 0x200   : > { %v699_v40 = vpop.eup %698 }
 0x201   : > { %v701_v41 = vpop.eup %700  ;;  %v474_v43 = vsub.f32 %v896_v14, %v470_v39  ;;  %v346_v44 = vmul.f32 %v699_v40, %v342_v38  ;;  %v462_v56 = vmul.f32 %v458_v42, %v345_v36 }
 0x202   : > { %v703_v46 = vpop.eup %702  ;;  %v347_v54 = vmul.f32 %v701_v41, %v343_v47 }
 0x203   : > { %v478_v48 = vmul.f32 %v474_v43, %v458_v42  ;;  %v471_v49 = vmul.f32 %v346_v44, %v907_v20  ;;  %v463_v50 = vmul.f32 %v459_v45, %v346_v44  ;;  %v460_v52 = vsub.f32 1.0, %v703_v46 }
 0x204   : > { %v705_v51 = vpop.eup %704  ;;  %v472_v20 = vmul.f32 %v347_v54, %v909_v21  ;;  %v466_v61 = vadd.f32 %v697_v37, %v462_v56 }
 0x205   : > { %v707_v53 = vpop.eup %706  ;;  %512 = vperm.xlu1 %683, %v478_v48   ;;  %v475_v14 = vsub.f32 %v905_v19, %v471_v49  ;;  %v467_v55 = vadd.f32 %v695_v35, %v463_v50  ;;  %v464_v58 = vmul.f32 %v460_v52, %v347_v54  ;;  %v348_v59 = vmul.f32 %v705_v51, %v344_v15 }
 0x206   : > { %v461_v60 = vsub.f32 1.0, %v707_v53  ;;  %v476_v19 = vsub.f32 %v914_v23, %v472_v20 }
 0x207   : > { %v479_v57 = vmul.f32 %v475_v14, %v459_v45  ;;  %v468_v62 = vadd.f32 %v703_v46, %v464_v58  ;;  %v473_v3 = vmul.f32 %v348_v59, %v918_v25 }
 0x208   : > { %v465_v63 = vmul.f32 %v461_v60, %v348_v59  ;;  %v480_v7 = vmul.f32 %v476_v19, %v460_v52 }
 0x209   : > { %517 = vperm.xlu0 %682, %v479_v57   ;;  %489 = vperm.xlu1 %683, %v467_v55   ;;  %v477_v11 = vsub.f32 %v925_v27, %v473_v3 }
 0x20a   : > { %v469_v10 = vadd.f32 %v707_v53, %v465_v63 }
 0x20b   : > { %v481_v12 = vmul.f32 %v477_v11, %v461_v60 }
 0x20d   : > { %484 = vperm.xlu0 %682, %v466_v61   ;;  %494 = vperm.xlu1 %683, %v468_v62  }
 0x211   : > { %522 = vperm.xlu1 %683, %v480_v7   ;;  %499 = vperm.xlu0 %682, %v469_v10  }
 0x215   : > { %527 = vperm.xlu0 %682, %v481_v12  }
 0x284   : > { %v513_v21 = vpop.permute.xlu1 %512 }
 0x288   : > { %v518_v13 = vpop.permute.xlu0 %517  ;;  %v490_v16 = vpop.permute.xlu1 %489 }
 0x289   : > { %v504_v25 = vmul.f32 %v490_v16, %v873_v2  ;;  %v505_v17 = vmul.f32 %v490_v16, %v877_v4 }
 0x28b   : > { %v532_v18 = vadd.f32 %v518_v13, %v504_v25  ;;  %v533_v23 = vadd.f32 %v518_v13, %v505_v17 }
 0x28c   : > { %v485_v22 = vpop.permute.xlu0 %484  ;;  %v495_v24 = vpop.permute.xlu1 %494 }
 0x28d   : > { %540 = vst [vmem:[%s271_s20 + $0x10] sm:$0xff] %v532_v18  ;;  %541 = vst [vmem:[%s271_s20 + $0x18] sm:$0xff] %v533_v23  ;;  %v502_v27 = vmul.f32 %v485_v22, %v869_v0  ;;  %v503_v26 = vmul.f32 %v485_v22, %v871_v1  ;;  %v506_v30 = vmul.f32 %v495_v24, %v879_v5 }
 0x28e   : > { %v507_v2 = vmul.f32 %v495_v24, %v881_v6 }
 0x28f   : > { %v530_v28 = vadd.f32 %v513_v21, %v502_v27  ;;  %v531_v29 = vadd.f32 %v513_v21, %v503_v26 }
 0x290   : > { %v500_v31 = vpop.permute.xlu0 %499  ;;  %v523_v4 = vpop.permute.xlu1 %522 }
 0x291   : > { %538 = vst [vmem:[%s271_s20] sm:$0xff] %v530_v28  ;;  %539 = vst [vmem:[%s271_s20 + $0x8] sm:$0xff] %v531_v29  ;;  %v534_v32 = vadd.f32 %v523_v4, %v506_v30  ;;  %v535_v33 = vadd.f32 %v523_v4, %v507_v2  ;;  %v508_v0 = vmul.f32 %v500_v31, %v885_v8 }
 0x292   : > { %v509_v1 = vmul.f32 %v500_v31, %v887_v9 }
 0x293   : > { %542 = vst [vmem:[%s271_s20 + $0x20] sm:$0xff] %v534_v32  ;;  %543 = vst [vmem:[%s271_s20 + $0x28] sm:$0xff] %v535_v33 }
 0x294   : > { %v528_v34 = vpop.permute.xlu0 %527 }
 0x295   : > { %v536_v5 = vadd.f32 %v528_v34, %v508_v0  ;;  %v537_v6 = vadd.f32 %v528_v34, %v509_v1 }
 0x297   : > { %544 = vst [vmem:[%s271_s20 + $0x30] sm:$0xff] %v536_v5  ;;  %545 = vst [vmem:[%s271_s20 + $0x38] sm:$0xff] %v537_v6 }
 0x298   : > { %721 = shalt.err (!%p718_p3)
}
 0x299   : > { %s722_s16 = scalar_lea.hbm %s1027_s8, 1024  ;;  %s726_s19 = scalar_lea.hbm %s1081_s7, 2048 }
 0x29a   : > { %p723_p4 = scmp.ne.s32.totalorder %s1027_s8, %s722_s16  ;;  %p727_p9 = scmp.lt.u32.totalorder %s1027_s8, %s1081_s7 }
 0x29b   : > { %p728_p10 = scmp.lt.u32.totalorder %s726_s19, %s722_s16  ;;  %p730_p12 = scmp.lt.u32.totalorder %s722_s16, %s1027_s8 }
 0x29c   : > { %p724_p7 = pnand %p723_p4, %p854_p5 }
 0x29d   : > { %p729_p11 = por %p728_p10, %p727_p9 }
 0x29e   : > { %p725_p8 = pneg %p724_p7 }
 0x29f   : > { %p731_p13 = por %p730_p12, %p729_p11 }
 0x2a1   : > { %p732_p0 = pnand %p731_p13, %p725_p8 }
 0x2a3   : > { %735 = shalt.err (!%p732_p0)
}
 0x2a4   : > { %s774_s23 = smov 256   ;;  %s775_s29 = smov 16  }
 0x2a5   : > { %640 = dma.vmem_to_hbm [thread:$0]  (%p854_p5), %s1029_s22, 1024, %s1027_s8, %s1033_s28, %s774_s23, %s774_s23, %s775_s29  }
 0x2a6 PF: > { %p646_p1 = scmp.ge.s32.totalorder %s770_s27, 2  ;;  %s575_s9 = sand.u32 1, %s758_s24  }
 0x2a7   : > { %s576_s13 = scalar_lea.sflag [#allocation3], %s575_s9 }
 0x2a8   : > { %p643_p2 = pnand %p646_p1, %p858_p6 }
 0x2aa   : > { %753 = dma.done.wait (!%p643_p2), %s576_s13, 1024  }
 0x2ab   : > { %755 = vsyncadd (!%p643_p2), %s576_s13, 4294966272  ;;  %p17_p3 = scmp.ge.s32.totalorder %s841_s30, 4   ;;  %s1084_s24 = smov %s762_s25 }
 0x2ac   : > { %s1085_s25 = smov %s766_s26  ;;  %s1086_s26 = smov %s852_s10 }
 0x2ad   : > { %s1087_s27 = smov %s841_s30  ;;  %19 = sbr.rel (!%p17_p3) target bundleno = 3 (0x3), region = 83 }
 0x2b4   :  { %581 = vsyncpa [#allocation3], 1 }
 0x2b5   :  { %583 = vsyncpa [#allocation3 + $0x1], 1 }

</bundles_post_ra>
